<compile_context>
chip_gen: v7x
topology: tpu7x:2x2x1
jax: 0.10.0
libtpu: 0.0.40
codegen_flags: <defaults>
</compile_context>

<pallas_src>
import functools

import jax
import jax.numpy as jnp
from jax.experimental import pallas as pl
from jax.experimental.pallas import tpu as pltpu


def _deepset_kernel(x_ref,
                    w1_ref, b1_ref, w2_ref, b2_ref,
                    w34_ref, b34_ref, w5_ref, b5_ref, w6_ref, b6_ref,
                    o_ref, *, set_size, true_set_size, matmul_dtype):
    """x_ref: (TB*Sp, H) encoder-input rows (Sp consecutive rows per set)."""
    rows, H = x_ref.shape
    Sp = set_size
    TB = rows // Sp

    # --- encoder layers 1 & 2 : M = TB*Sp rows (MXU-shaped) ---
    x = x_ref[...]
    if x.dtype != matmul_dtype:
        x = x.astype(matmul_dtype)
    h = jnp.dot(x, w1_ref[...], preferred_element_type=jnp.float32) + b1_ref[...]
    h = jnp.maximum(h, 0.0)
    h = jnp.dot(h.astype(matmul_dtype), w2_ref[...],
                preferred_element_type=jnp.float32) + b2_ref[...]
    h = jnp.maximum(h, 0.0)

    # --- mean over the set dim, hoisted before layer 3 (pooling is linear) ---
    # H stays on lanes; the reduction runs over the sublane/set axis.
    h3 = h.reshape(TB, Sp, H)
    if true_set_size != Sp:
        # Set dim was zero-padded in the wrapper; padded rows picked up biases
        # through the encoder, so mask them out before the sum.
        smask = jax.lax.broadcasted_iota(jnp.int32, (Sp, H), 0) < true_set_size
        h3 = jnp.where(smask[None, :, :], h3, 0.0)
    pooled = jnp.sum(h3, axis=1) * (1.0 / true_set_size)          # (TB, H) f32

    # --- pack two sets per 128-lane row -> lane-dense decoder + output store ---
    half = TB // 2
    packed = jnp.concatenate([pooled[:half], pooled[half:]], axis=-1)  # (TB/2, 2H)

    # --- folded encoder-layer-3 @ decoder-layer-1, then rest of decoder.
    #     Weights are block-diagonal (2H, 2H); biases tiled to (1, 2H). ---
    d = jnp.dot(packed.astype(matmul_dtype), w34_ref[...],
                preferred_element_type=jnp.float32) + b34_ref[...]
    d = jnp.maximum(d, 0.0)
    d = jnp.dot(d.astype(matmul_dtype), w5_ref[...],
                preferred_element_type=jnp.float32) + b5_ref[...]
    d = jnp.maximum(d, 0.0)
    d = jnp.dot(d.astype(matmul_dtype), w6_ref[...],
                preferred_element_type=jnp.float32) + b6_ref[...]

    o_ref[...] = d.astype(o_ref.dtype)


def _block_diag2(w):
    z = jnp.zeros_like(w)
    top = jnp.concatenate([w, z], axis=1)
    bot = jnp.concatenate([z, w], axis=1)
    return jnp.concatenate([top, bot], axis=0)


def deepset_forward(x, params, *, target_tb=1024,
                    matmul_dtype=jnp.bfloat16, x_dtype=jnp.bfloat16):
    """x: (B, S, H) float32.  params: list of 6 (W[H,H], b[1,H]) pairs.

    target_tb:    max batches per grid step (1024 default; at S=8, H=64 bf16 the
                  x block is ~1 MB, well inside scoped VMEM on all generations,
                  including v7x's 64 MiB; raise toward 2048 on v7x if desired).
    matmul_dtype: dtype of the dot inputs (bf16 default for MXU throughput).
    x_dtype:      dtype x is shipped to the kernel in (bf16 default: kernel is
                  HBM-read-bound on x).  Use jnp.float32 for both to get the
                  exact-precision escape hatch.
    """
    out_dtype = x.dtype
    B, S, H = x.shape
    (w1, b1), (w2, b2), (w3, b3), (w4, b4), (w5, b5), (w6, b6) = params

    # Fold encoder layer 3 with decoder layer 1 (no nonlinearity in between):
    # (p @ w3 + b3) @ w4 + b4 == p @ (w3 @ w4) + (b3 @ w4 + b4).
    w34 = w3 @ w4
    b34 = b3 @ w4 + b4

    weights = [w1.astype(matmul_dtype),
               w2.astype(matmul_dtype),
               _block_diag2(w34).astype(matmul_dtype),
               _block_diag2(w5).astype(matmul_dtype),
               _block_diag2(w6).astype(matmul_dtype)]
    biases = [b1.astype(jnp.float32),
              b2.astype(jnp.float32),
              jnp.concatenate([b34, b34], axis=-1).astype(jnp.float32),
              jnp.concatenate([b5, b5], axis=-1).astype(jnp.float32),
              jnp.concatenate([b6, b6], axis=-1).astype(jnp.float32)]

    # --- batch tile: big (amortizes the ~0.35us/step overhead), even, and for
    #     B >= 16 an even number of >= 2 grid steps so v7x's two TensorCores
    #     both get work; TB % 16 == 0 keeps the packed output block legal. ---
    if B < 16:
        TB = B + (B % 2)                 # even; single step, block == full array
    else:
        G = max(2, pl.cdiv(B, max(1, target_tb)))
        G += G % 2                       # even step count
        TB = ((pl.cdiv(B, G) + 15) // 16) * 16
    Bp = pl.cdiv(B, TB) * TB

    # --- set dim padded to a multiple of 8 (layout-free sublane mean) ---
    Sp = max(8, ((S + 7) // 8) * 8)

    xk = x.astype(x_dtype)
    if (Bp != B) or (Sp != S):
        xk = jnp.pad(xk, ((0, Bp - B), (0, Sp - S), (0, 0)))
    xk = xk.reshape(Bp * Sp, H)          # free contiguous view; no bf16 reshape in-kernel

    w_spec_h = pl.BlockSpec((H, H), lambda i: (0, 0))
    w_spec_2h = pl.BlockSpec((2 * H, 2 * H), lambda i: (0, 0))
    b_spec_h = pl.BlockSpec((1, H), lambda i: (0, 0))
    b_spec_2h = pl.BlockSpec((1, 2 * H), lambda i: (0, 0))

    in_specs = [pl.BlockSpec((TB * Sp, H), lambda i: (i, 0)),
                w_spec_h, b_spec_h,       # encoder layer 1
                w_spec_h, b_spec_h,       # encoder layer 2
                w_spec_2h, b_spec_2h,     # folded layer 3 / decoder 1 (block-diag)
                w_spec_2h, b_spec_2h,     # decoder 2
                w_spec_2h, b_spec_2h]     # decoder 3

    flat_params = []
    for w, b in zip(weights, biases):
        flat_params += [w, b]

    kernel = functools.partial(_deepset_kernel, set_size=Sp, true_set_size=S,
                               matmul_dtype=matmul_dtype)

    out = pl.pallas_call(
        kernel,
        out_shape=jax.ShapeDtypeStruct((Bp // 2, 2 * H), out_dtype),
        grid_spec=pltpu.PrefetchScalarGridSpec(
            num_scalar_prefetch=0,
            grid=(Bp // TB,),
            in_specs=in_specs,
            out_specs=pl.BlockSpec((TB // 2, 2 * H), lambda i: (i, 0)),
        ),
        compiler_params=pltpu.CompilerParams(
            dimension_semantics=("parallel",)),
    )(xk, *flat_params)

    # Un-pack the two-sets-per-row packing (done per grid block) back to (B, H).
    steps = Bp // TB
    out = out.reshape(steps, TB // 2, 2, H)
    out = jnp.transpose(out, (0, 2, 1, 3)).reshape(Bp, H)
    return out[:B]


def reference_forward(x, params):
    (w1, b1), (w2, b2), (w3, b3), (w4, b4), (w5, b5), (w6, b6) = params
    h = jnp.maximum(x @ w1 + b1, 0.0)
    h = jnp.maximum(h @ w2 + b2, 0.0)
    h = h @ w3 + b3
    p = h.mean(axis=-2)
    d = jnp.maximum(p @ w4 + b4, 0.0)
    d = jnp.maximum(d @ w5 + b5, 0.0)
    d = d @ w6 + b6
    return d


if __name__ == "__main__":
    hidden_dim = 64
    set_size = 8

    key = jax.random.PRNGKey(0)
    keys = jax.random.split(key, 15)

    # Deterministic synthetic parameters.  PyTorch Linear stores W as (out, in)
    # and computes x @ W.T + b; here we directly build (in, out) matrices,
    # which is semantically equivalent for a fresh random init.
    scale = 1.0 / jnp.sqrt(hidden_dim)
    params = []
    for i in range(6):
        w = jax.random.uniform(keys[2 * i], (hidden_dim, hidden_dim),
                               minval=-scale, maxval=scale, dtype=jnp.float32)
        b = jax.random.uniform(keys[2 * i + 1], (1, hidden_dim),
                               minval=-scale, maxval=scale, dtype=jnp.float32)
        params.append((w, b))

    # Case 1: small batch (B < 16, single grid step, block == full array).
    x_small = jax.random.normal(keys[12], (2, set_size, hidden_dim),
                                dtype=jnp.float32)
    ref_small = reference_forward(x_small, params)

    out_small_f32 = jax.block_until_ready(
        deepset_forward(x_small, params,
                        matmul_dtype=jnp.float32, x_dtype=jnp.float32))
    assert out_small_f32.shape == (2, hidden_dim)
    assert jnp.allclose(out_small_f32, ref_small, atol=1e-4, rtol=1e-4), \
        "mismatch vs reference (small batch, f32)"

    out_small_bf16 = jax.block_until_ready(deepset_forward(x_small, params))
    assert jnp.allclose(out_small_bf16, ref_small, atol=5e-2, rtol=5e-2), \
        "mismatch vs reference (small batch, bf16 fast path)"

    # Case 2: batch that exercises tiling (TB multiple of 16), padding of the
    # tail tile, a multi-step parallel grid, and the packed lane-dense output.
    x_big = jax.random.normal(keys[13], (20, set_size, hidden_dim),
                              dtype=jnp.float32)
    ref_big = reference_forward(x_big, params)

    out_big_f32 = jax.block_until_ready(
        deepset_forward(x_big, params,
                        matmul_dtype=jnp.float32, x_dtype=jnp.float32))
    assert out_big_f32.shape == (20, hidden_dim)
    assert jnp.allclose(out_big_f32, ref_big, atol=1e-4, rtol=1e-4), \
        "mismatch vs reference (tiled batch, f32)"

    out_big_bf16 = jax.block_until_ready(deepset_forward(x_big, params))
    assert jnp.allclose(out_big_bf16, ref_big, atol=5e-2, rtol=5e-2), \
        "mismatch vs reference (tiled batch, bf16 fast path)"

    # Case 3: set size that is not a multiple of 8 (exercises the padded-set
    # masked mean path), exact f32.
    x_odd = jax.random.normal(keys[14], (4, 12, hidden_dim), dtype=jnp.float32)
    ref_odd = reference_forward(x_odd, params)
    out_odd = jax.block_until_ready(
        deepset_forward(x_odd, params,
                        matmul_dtype=jnp.float32, x_dtype=jnp.float32))
    assert out_odd.shape == (4, hidden_dim)
    assert jnp.allclose(out_odd, ref_odd, atol=1e-4, rtol=1e-4), \
        "mismatch vs reference (non-multiple-of-8 set size)"

    print("KERNEL_OK")
</pallas_src>

<mosaic_0001>
module attributes {stable_mosaic.version = 11 : i64} {
  func.func @_deepset_kernel(%arg0: i32, %arg1: memref<16x64xf32, #tpu.memory_space<vmem>>, %arg2: memref<64x64xf32, #tpu.memory_space<vmem>>, %arg3: memref<1x64xf32, #tpu.memory_space<vmem>>, %arg4: memref<64x64xf32, #tpu.memory_space<vmem>>, %arg5: memref<1x64xf32, #tpu.memory_space<vmem>>, %arg6: memref<128x128xf32, #tpu.memory_space<vmem>>, %arg7: memref<1x128xf32, #tpu.memory_space<vmem>>, %arg8: memref<128x128xf32, #tpu.memory_space<vmem>>, %arg9: memref<1x128xf32, #tpu.memory_space<vmem>>, %arg10: memref<128x128xf32, #tpu.memory_space<vmem>>, %arg11: memref<1x128xf32, #tpu.memory_space<vmem>>, %arg12: memref<1x128xf32, #tpu.memory_space<vmem>>) attributes {dimension_semantics = [#tpu.dimension_semantics<parallel>], iteration_bounds = array<i64: 1>, scalar_prefetch = 0 : i64, scratch_operands = 0 : i64, tpu.core_type = #tpu.core_type<tc>, window_params = [{transform_indices = @transform_0, window_bounds = array<i64: 16, 64>}, {pipeline_mode = #tpu.pipeline_mode<synchronous>, transform_indices = @transform_1, window_bounds = array<i64: 64, 64>}, {pipeline_mode = #tpu.pipeline_mode<synchronous>, transform_indices = @transform_2, window_bounds = array<i64: 1, 64>}, {pipeline_mode = #tpu.pipeline_mode<synchronous>, transform_indices = @transform_3, window_bounds = array<i64: 64, 64>}, {pipeline_mode = #tpu.pipeline_mode<synchronous>, transform_indices = @transform_4, window_bounds = array<i64: 1, 64>}, {pipeline_mode = #tpu.pipeline_mode<synchronous>, transform_indices = @transform_5, window_bounds = array<i64: 128, 128>}, {pipeline_mode = #tpu.pipeline_mode<synchronous>, transform_indices = @transform_6, window_bounds = array<i64: 1, 128>}, {pipeline_mode = #tpu.pipeline_mode<synchronous>, transform_indices = @transform_7, window_bounds = array<i64: 128, 128>}, {pipeline_mode = #tpu.pipeline_mode<synchronous>, transform_indices = @transform_8, window_bounds = array<i64: 1, 128>}, {pipeline_mode = #tpu.pipeline_mode<synchronous>, transform_indices = @transform_9, window_bounds = array<i64: 128, 128>}, {pipeline_mode = #tpu.pipeline_mode<synchronous>, transform_indices = @transform_10, window_bounds = array<i64: 1, 128>}, {transform_indices = @transform_11, window_bounds = array<i64: 1, 128>}]} {
    %c0 = arith.constant 0 : index
    %c0_0 = arith.constant 0 : index
    %0 = vector.load %arg1[%c0, %c0_0] : memref<16x64xf32, #tpu.memory_space<vmem>>, vector<16x64xf32>
    %c0_1 = arith.constant 0 : index
    %c0_2 = arith.constant 0 : index
    %1 = vector.load %arg2[%c0_1, %c0_2] : memref<64x64xf32, #tpu.memory_space<vmem>>, vector<64x64xf32>
    %cst = arith.constant dense<0.000000e+00> : vector<16x64xf32>
    %2 = tpu.matmul %0, %1, %cst {dimension_numbers = #tpu.dot_dimension_numbers<[1], [0], [0], [1], [0, 0, 1, 1], [], []>} : vector<16x64xf32>, vector<64x64xf32>, vector<16x64xf32> -> vector<16x64xf32>
    %c0_3 = arith.constant 0 : index
    %c0_4 = arith.constant 0 : index
    %3 = vector.load %arg3[%c0_3, %c0_4] : memref<1x64xf32, #tpu.memory_space<vmem>>, vector<1x64xf32>
    %4 = vector.broadcast %3 : vector<1x64xf32> to vector<16x64xf32>
    %5 = arith.addf %2, %4 : vector<16x64xf32>
    %cst_5 = arith.constant 0.000000e+00 : f32
    %6 = vector.broadcast %cst_5 : f32 to vector<16x64xf32>
    %7 = arith.maximumf %5, %6 : vector<16x64xf32>
    %c0_6 = arith.constant 0 : index
    %c0_7 = arith.constant 0 : index
    %8 = vector.load %arg4[%c0_6, %c0_7] : memref<64x64xf32, #tpu.memory_space<vmem>>, vector<64x64xf32>
    %cst_8 = arith.constant dense<0.000000e+00> : vector<16x64xf32>
    %9 = tpu.matmul %7, %8, %cst_8 {dimension_numbers = #tpu.dot_dimension_numbers<[1], [0], [0], [1], [0, 0, 1, 1], [], []>} : vector<16x64xf32>, vector<64x64xf32>, vector<16x64xf32> -> vector<16x64xf32>
    %c0_9 = arith.constant 0 : index
    %c0_10 = arith.constant 0 : index
    %10 = vector.load %arg5[%c0_9, %c0_10] : memref<1x64xf32, #tpu.memory_space<vmem>>, vector<1x64xf32>
    %11 = vector.broadcast %10 : vector<1x64xf32> to vector<16x64xf32>
    %12 = arith.addf %9, %11 : vector<16x64xf32>
    %cst_11 = arith.constant 0.000000e+00 : f32
    %13 = vector.broadcast %cst_11 : f32 to vector<16x64xf32>
    %14 = arith.maximumf %12, %13 : vector<16x64xf32>
    %15 = vector.shape_cast %14 : vector<16x64xf32> to vector<2x8x64xf32>
    %cst_12 = arith.constant dense<0.000000e+00> : vector<2x64xf32>
    %16 = vector.multi_reduction <add>, %15, %cst_12 [1] : vector<2x8x64xf32> to vector<2x64xf32>
    %cst_13 = arith.constant 1.250000e-01 : f32
    %17 = vector.broadcast %cst_13 : f32 to vector<2x64xf32>
    %18 = arith.mulf %16, %17 : vector<2x64xf32>
    %19 = vector.extract_strided_slice %18 {offsets = [0, 0], sizes = [1, 64], strides = [1, 1]} : vector<2x64xf32> to vector<1x64xf32>
    %20 = vector.extract_strided_slice %18 {offsets = [1, 0], sizes = [1, 64], strides = [1, 1]} : vector<2x64xf32> to vector<1x64xf32>
    %21 = tpu.concatenate %19, %20 in 1 : vector<1x64xf32>, vector<1x64xf32> -> vector<1x128xf32>
    %c0_14 = arith.constant 0 : index
    %c0_15 = arith.constant 0 : index
    %22 = vector.load %arg6[%c0_14, %c0_15] : memref<128x128xf32, #tpu.memory_space<vmem>>, vector<128x128xf32>
    %cst_16 = arith.constant dense<0.000000e+00> : vector<1x128xf32>
    %23 = tpu.matmul %21, %22, %cst_16 {dimension_numbers = #tpu.dot_dimension_numbers<[1], [0], [0], [1], [0, 0, 1, 1], [], []>} : vector<1x128xf32>, vector<128x128xf32>, vector<1x128xf32> -> vector<1x128xf32>
    %c0_17 = arith.constant 0 : index
    %c0_18 = arith.constant 0 : index
    %24 = vector.load %arg7[%c0_17, %c0_18] : memref<1x128xf32, #tpu.memory_space<vmem>>, vector<1x128xf32>
    %25 = arith.addf %23, %24 : vector<1x128xf32>
    %cst_19 = arith.constant 0.000000e+00 : f32
    %26 = vector.broadcast %cst_19 : f32 to vector<1x128xf32>
    %27 = arith.maximumf %25, %26 : vector<1x128xf32>
    %c0_20 = arith.constant 0 : index
    %c0_21 = arith.constant 0 : index
    %28 = vector.load %arg8[%c0_20, %c0_21] : memref<128x128xf32, #tpu.memory_space<vmem>>, vector<128x128xf32>
    %cst_22 = arith.constant dense<0.000000e+00> : vector<1x128xf32>
    %29 = tpu.matmul %27, %28, %cst_22 {dimension_numbers = #tpu.dot_dimension_numbers<[1], [0], [0], [1], [0, 0, 1, 1], [], []>} : vector<1x128xf32>, vector<128x128xf32>, vector<1x128xf32> -> vector<1x128xf32>
    %c0_23 = arith.constant 0 : index
    %c0_24 = arith.constant 0 : index
    %30 = vector.load %arg9[%c0_23, %c0_24] : memref<1x128xf32, #tpu.memory_space<vmem>>, vector<1x128xf32>
    %31 = arith.addf %29, %30 : vector<1x128xf32>
    %cst_25 = arith.constant 0.000000e+00 : f32
    %32 = vector.broadcast %cst_25 : f32 to vector<1x128xf32>
    %33 = arith.maximumf %31, %32 : vector<1x128xf32>
    %c0_26 = arith.constant 0 : index
    %c0_27 = arith.constant 0 : index
    %34 = vector.load %arg10[%c0_26, %c0_27] : memref<128x128xf32, #tpu.memory_space<vmem>>, vector<128x128xf32>
    %cst_28 = arith.constant dense<0.000000e+00> : vector<1x128xf32>
    %35 = tpu.matmul %33, %34, %cst_28 {dimension_numbers = #tpu.dot_dimension_numbers<[1], [0], [0], [1], [0, 0, 1, 1], [], []>} : vector<1x128xf32>, vector<128x128xf32>, vector<1x128xf32> -> vector<1x128xf32>
    %c0_29 = arith.constant 0 : index
    %c0_30 = arith.constant 0 : index
    %36 = vector.load %arg11[%c0_29, %c0_30] : memref<1x128xf32, #tpu.memory_space<vmem>>, vector<1x128xf32>
    %37 = arith.addf %35, %36 : vector<1x128xf32>
    %c0_31 = arith.constant 0 : index
    %c0_32 = arith.constant 0 : index
    %38 = vector.load %arg12[%c0_31, %c0_32] : memref<1x128xf32, #tpu.memory_space<vmem>>, vector<1x128xf32>
    tpu.vector_store %arg12[%c0_31, %c0_32], %37 {strides = array<i32>} : memref<1x128xf32, #tpu.memory_space<vmem>>, vector<1x128xf32>,
    return
  }
  func.func @transform_0(%arg0: i32) -> (i32, i32) {
    %c0_i32 = arith.constant 0 : i32
    %c0_i32_0 = arith.constant 0 : i32
    return %arg0, %c0_i32 : i32, i32
  }
  func.func @transform_1(%arg0: i32) -> (i32, i32) {
    %c0_i32 = arith.constant 0 : i32
    %c0_i32_0 = arith.constant 0 : i32
    %c0_i32_1 = arith.constant 0 : i32
    return %c0_i32, %c0_i32_0 : i32, i32
  }
  func.func @transform_2(%arg0: i32) -> (i32, i32) {
    %c0_i32 = arith.constant 0 : i32
    %c0_i32_0 = arith.constant 0 : i32
    %c0_i32_1 = arith.constant 0 : i32
    return %c0_i32, %c0_i32_0 : i32, i32
  }
  func.func @transform_3(%arg0: i32) -> (i32, i32) {
    %c0_i32 = arith.constant 0 : i32
    %c0_i32_0 = arith.constant 0 : i32
    %c0_i32_1 = arith.constant 0 : i32
    return %c0_i32, %c0_i32_0 : i32, i32
  }
  func.func @transform_4(%arg0: i32) -> (i32, i32) {
    %c0_i32 = arith.constant 0 : i32
    %c0_i32_0 = arith.constant 0 : i32
    %c0_i32_1 = arith.constant 0 : i32
    return %c0_i32, %c0_i32_0 : i32, i32
  }
  func.func @transform_5(%arg0: i32) -> (i32, i32) {
    %c0_i32 = arith.constant 0 : i32
    %c0_i32_0 = arith.constant 0 : i32
    %c0_i32_1 = arith.constant 0 : i32
    return %c0_i32, %c0_i32_0 : i32, i32
  }
  func.func @transform_6(%arg0: i32) -> (i32, i32) {
    %c0_i32 = arith.constant 0 : i32
    %c0_i32_0 = arith.constant 0 : i32
    %c0_i32_1 = arith.constant 0 : i32
    return %c0_i32, %c0_i32_0 : i32, i32
  }
  func.func @transform_7(%arg0: i32) -> (i32, i32) {
    %c0_i32 = arith.constant 0 : i32
    %c0_i32_0 = arith.constant 0 : i32
    %c0_i32_1 = arith.constant 0 : i32
    return %c0_i32, %c0_i32_0 : i32, i32
  }
  func.func @transform_8(%arg0: i32) -> (i32, i32) {
    %c0_i32 = arith.constant 0 : i32
    %c0_i32_0 = arith.constant 0 : i32
    %c0_i32_1 = arith.constant 0 : i32
    return %c0_i32, %c0_i32_0 : i32, i32
  }
  func.func @transform_9(%arg0: i32) -> (i32, i32) {
    %c0_i32 = arith.constant 0 : i32
    %c0_i32_0 = arith.constant 0 : i32
    %c0_i32_1 = arith.constant 0 : i32
    return %c0_i32, %c0_i32_0 : i32, i32
  }
  func.func @transform_10(%arg0: i32) -> (i32, i32) {
    %c0_i32 = arith.constant 0 : i32
    %c0_i32_0 = arith.constant 0 : i32
    %c0_i32_1 = arith.constant 0 : i32
    return %c0_i32, %c0_i32_0 : i32, i32
  }
  func.func @transform_11(%arg0: i32) -> (i32, i32) {
    %c0_i32 = arith.constant 0 : i32
    %c0_i32_0 = arith.constant 0 : i32
    return %arg0, %c0_i32 : i32, i32
  }
}

</mosaic_0001>

<bundles_post_ra>
// kernel: tpu_custom_call.1
= control target key start
LH: loop header
LB: loop body
LE: loop exit
PB: predicated region body
PF: predicated region fallthrough
CT: control target
= control target key end

     0   :  { %16 = vsyncpa [#allocation3], 0  ;;  %s1369_s0 = inlined_call_operand.hbm [shape: f32[16,64], index: 0, kind: input, shape index: {}]   ;;  %s1370_s1 = inlined_call_operand.hbm [shape: f32[64,64], index: 1, kind: input, shape index: {}]   ;;  %s1371_s2 = inlined_call_operand.vmem [shape: f32[1,64], index: 2, kind: input, shape index: {}]   ;;  %s1372_s3 = inlined_call_operand.hbm [shape: f32[64,64], index: 3, kind: input, shape index: {}]   ;;  %s1373_s4 = inlined_call_operand.vmem [shape: f32[1,64], index: 4, kind: input, shape index: {}]   ;;  %s1374_s5 = inlined_call_operand.hbm [shape: f32[128,128], index: 5, kind: input, shape index: {}]   ;;  %s1375_s6 = inlined_call_operand.vmem [shape: f32[1,128], index: 6, kind: input, shape index: {}]   ;;  %s1376_s7 = inlined_call_operand.hbm [shape: f32[128,128], index: 7, kind: input, shape index: {}]   ;;  %s1377_s8 = inlined_call_operand.vmem [shape: f32[1,128], index: 8, kind: input, shape index: {}]   ;;  %s1378_s9 = inlined_call_operand.hbm [shape: f32[128,128], index: 9, kind: input, shape index: {}]   ;;  %s1379_s10 = inlined_call_operand.vmem [shape: f32[1,128], index: 10, kind: input, shape index: {}]   ;;  %s1380_s11 = inlined_call_operand.hbm [shape: f32[1,128], index: 11, kind: output, shape index: {}]  }
   0x1   :  { %17 = vsyncpa [#allocation6], 0 }
   0x2   :  { %18 = vsyncpa [#allocation9], 0 }
   0x3   :  { %19 = vsyncpa [#allocation12], 0 }
   0x4   :  { %20 = vsyncpa [#allocation4], 0  ;;  %s1124_s17 = smov [#allocation5]   ;;  %s1125_s19 = smov [#allocation8]  }
   0x5   :  { %s38_s18 = sshll.u32 %s1124_s17, 4  ;;  %s66_s20 = sshll.u32 %s1125_s19, 4  ;;  %s39_s18 = int_to_ptr.vmem [resolvable:$true] %s38_s18  ;;  %s1197_s20 = int_to_ptr.vmem [resolvable:$true] %s66_s20 }
   0x6   :  { %s960_s23 = scalar_lea.hbm %s1370_s1, 1024 }
   0x7   :  { %p961_p0 = scmp.ne.s32.totalorder %s1370_s1, %s960_s23  ;;  %p964_p1 = scmp.lt.u32.totalorder %s960_s23, %s1370_s1 }
   0x9   :  { %p966_p2 = pnand %p964_p1, %p961_p0 }
   0xb   :  { %969 = shalt.err (!%p966_p2)
}
   0xc   :  { %s970_s28 = scalar_lea.vmem %s39_s18, 1024  ;;  %p975_p4 = scmp.lt.s32.totalorder %s39_s18, %s39_s18 }
   0xd   :  { %p971_p3 = scmp.ne.s32.totalorder %s39_s18, %s970_s28  ;;  %p976_p5 = scmp.lt.s32.totalorder %s970_s28, %s970_s28 }
   0xf   :  { %p977_p6 = por %p976_p5, %p975_p4 }
  0x11   :  { %p978_p7 = pnand %p977_p6, %p971_p3 }
  0x13   :  { %981 = shalt.err (!%p978_p7)
}
  0x14   :  { %s1126_s29 = smov 128   ;;  %s1127_s30 = smov 8  }
  0x15   :  { %44 = dma.hbm_to_vmem [thread:$0]  %s1370_s1, 1024, %s39_s18, [#allocation6], %s1126_s29, %s1126_s29, %s1127_s30  }
  0x16   :  { %s982_s16 = scalar_lea.hbm %s1374_s5, 2048 }
  0x17   :  { %p983_p8 = scmp.ne.s32.totalorder %s1374_s5, %s982_s16  ;;  %p986_p9 = scmp.lt.u32.totalorder %s982_s16, %s1374_s5 }
  0x19   :  { %p988_p10 = pnand %p986_p9, %p983_p8 }
  0x1b   :  { %991 = shalt.err (!%p988_p10)
}
  0x1c   :  { %s992_s23 = scalar_lea.vmem %s1197_s20, 2048  ;;  %p997_p12 = scmp.lt.s32.totalorder %s1197_s20, %s1197_s20 }
  0x1d   :  { %p993_p11 = scmp.ne.s32.totalorder %s1197_s20, %s992_s23  ;;  %p998_p13 = scmp.lt.s32.totalorder %s992_s23, %s992_s23 }
  0x1f   :  { %p999_p0 = por %p998_p13, %p997_p12 }
  0x21   :  { %p1000_p1 = pnand %p999_p0, %p993_p11 }
  0x23   :  { %1003 = shalt.err (!%p1000_p1)
}
  0x24   :  { %72 = dma.hbm_to_vmem [thread:$0]  %s1374_s5, 2048, %s1197_s20, [#allocation9], %s1126_s29, %s1126_s29, %s1127_s30  }
  0x25   :  { %s1128_s24 = smov [#allocation2]   ;;  %s1129_s26 = smov [#allocation7]  }
  0x26   :  { %s26_s25 = sshll.u32 %s1128_s24, 4  ;;  %s52_s27 = sshll.u32 %s1129_s26, 4  ;;  %s27_s25 = int_to_ptr.vmem [resolvable:$true] %s26_s25  ;;  %s1234_s27 = int_to_ptr.vmem [resolvable:$true] %s52_s27 }
  0x27   :  { %s1004_s13 = scalar_lea.hbm %s1369_s0, 256 }
  0x28   :  { %p1005_p2 = scmp.ne.s32.totalorder %s1369_s0, %s1004_s13  ;;  %p1008_p3 = scmp.lt.u32.totalorder %s1004_s13, %s1369_s0 }
  0x2a   :  { %p1010_p4 = pnand %p1008_p3, %p1005_p2 }
  0x2c   :  { %1013 = shalt.err (!%p1010_p4)
}
  0x2d   :  { %s1014_s5 = scalar_lea.vmem %s27_s25, 256  ;;  %p1019_p6 = scmp.lt.s32.totalorder %s27_s25, %s27_s25 }
  0x2e   :  { %p1015_p5 = scmp.ne.s32.totalorder %s27_s25, %s1014_s5  ;;  %p1020_p7 = scmp.lt.s32.totalorder %s1014_s5, %s1014_s5 }
  0x30   :  { %p1021_p8 = por %p1020_p7, %p1019_p6 }
  0x32   :  { %p1022_p9 = pnand %p1021_p8, %p1015_p5 }
  0x34   :  { %1025 = shalt.err (!%p1022_p9)
}
  0x35   :  { %32 = dma.hbm_to_vmem [thread:$0]  %s1369_s0, 256, %s27_s25, [#allocation3], %s1126_s29, %s1126_s29, %s1127_s30  }
  0x36   :  { %s1026_s23 = scalar_lea.hbm %s1372_s3, 1024 }
  0x37   :  { %p1027_p10 = scmp.ne.s32.totalorder %s1372_s3, %s1026_s23  ;;  %p1030_p11 = scmp.lt.u32.totalorder %s1026_s23, %s1372_s3 }
  0x39   :  { %p1032_p12 = pnand %p1030_p11, %p1027_p10 }
  0x3b   :  { %1035 = shalt.err (!%p1032_p12)
}
  0x3c   :  { %s1036_s28 = scalar_lea.vmem %s1234_s27, 1024  ;;  %p1041_p0 = scmp.lt.s32.totalorder %s1234_s27, %s1234_s27 }
  0x3d   :  { %p1037_p13 = scmp.ne.s32.totalorder %s1234_s27, %s1036_s28  ;;  %p1042_p1 = scmp.lt.s32.totalorder %s1036_s28, %s1036_s28 }
  0x3f   :  { %p1043_p2 = por %p1042_p1, %p1041_p0 }
  0x41   :  { %p1044_p3 = pnand %p1043_p2, %p1037_p13 }
  0x43   :  { %1047 = shalt.err (!%p1044_p3)
}
  0x44   :  { %58 = dma.hbm_to_vmem [thread:$0]  %s1372_s3, 1024, %s1234_s27, [#allocation6], %s1126_s29, %s1126_s29, %s1127_s30  }
  0x45   :  { %s1130_s12 = smov [#allocation10]   ;;  %s1131_s14 = smov [#allocation11]  }
  0x46   :  { %s80_s13 = sshll.u32 %s1130_s12, 4  ;;  %s94_s15 = sshll.u32 %s1131_s14, 4  ;;  %s81_s13 = int_to_ptr.vmem [resolvable:$true] %s80_s13  ;;  %s1271_s15 = int_to_ptr.vmem [resolvable:$true] %s94_s15 }
  0x47   :  { %s1048_s5 = scalar_lea.hbm %s1376_s7, 2048 }
  0x48   :  { %p1049_p4 = scmp.ne.s32.totalorder %s1376_s7, %s1048_s5  ;;  %p1052_p5 = scmp.lt.u32.totalorder %s1048_s5, %s1376_s7 }
  0x4a   :  { %p1054_p6 = pnand %p1052_p5, %p1049_p4 }
  0x4c   :  { %1057 = shalt.err (!%p1054_p6)
}
  0x4d   :  { %s1058_s3 = scalar_lea.vmem %s81_s13, 2048  ;;  %p1063_p8 = scmp.lt.s32.totalorder %s81_s13, %s81_s13 }
  0x4e   :  { %p1059_p7 = scmp.ne.s32.totalorder %s81_s13, %s1058_s3  ;;  %p1064_p9 = scmp.lt.s32.totalorder %s1058_s3, %s1058_s3 }
  0x50   :  { %p1065_p10 = por %p1064_p9, %p1063_p8 }
  0x52   :  { %p1066_p11 = pnand %p1065_p10, %p1059_p7 }
  0x54   :  { %1069 = shalt.err (!%p1066_p11)
}
  0x55   :  { %86 = dma.hbm_to_vmem [thread:$0]  %s1376_s7, 2048, %s81_s13, [#allocation9], %s1126_s29, %s1126_s29, %s1127_s30  }
  0x56   :  { %s1070_s24 = scalar_lea.hbm %s1378_s9, 2048 }
  0x57   :  { %p1071_p12 = scmp.ne.s32.totalorder %s1378_s9, %s1070_s24  ;;  %p1074_p13 = scmp.lt.u32.totalorder %s1070_s24, %s1378_s9 }
  0x59   :  { %p1076_p0 = pnand %p1074_p13, %p1071_p12 }
  0x5b   :  { %1079 = shalt.err (!%p1076_p0)
}
  0x5c   :  { %s1080_s12 = scalar_lea.vmem %s1271_s15, 2048  ;;  %p1085_p2 = scmp.lt.s32.totalorder %s1271_s15, %s1271_s15 }
  0x5d   :  { %p1081_p1 = scmp.ne.s32.totalorder %s1271_s15, %s1080_s12  ;;  %p1086_p3 = scmp.lt.s32.totalorder %s1080_s12, %s1080_s12 }
  0x5f   :  { %p1087_p4 = por %p1086_p3, %p1085_p2 }
  0x61   :  { %p1088_p5 = pnand %p1087_p4, %p1081_p1 }
  0x63   :  { %1091 = shalt.err (!%p1088_p5)
}
  0x64   :  { %100 = dma.hbm_to_vmem [thread:$0]  %s1378_s9, 2048, %s1271_s15, [#allocation12], %s1126_s29, %s1126_s29, %s1127_s30  }
  0x65   :  { %1114 = dma.done.wait [#allocation3], 256  }
  0x66   :  { %1115 = vsyncadd [#allocation3], 4294967040 }
  0x67   :  { %1116 = dma.done.wait [#allocation6], 2048  }
  0x68   :  { %1117 = vsyncadd [#allocation6], 4294965248 }
  0x69   :  { %1118 = dma.done.wait [#allocation9], 4096  }
  0x6a   :  { %1119 = vsyncadd [#allocation9], 4294963200 }
  0x6b   :  { %1120 = dma.done.wait [#allocation12], 2048  }
  0x6c   :  { %1121 = vsyncadd [#allocation12], 4294965248  ;;  %v123_v0 = vld [vmem:[#allocation5] sm:$0xff]  ;;  %v124_v1 = vld [vmem:[#allocation5 + $0x8] sm:$0xff]  ;;  %vm138_vm0 = vcmask 523264   ;;  %v1132_v36 = vmov 0.0|0.0  }
  0x6d   :  { %v125_v2 = vld [vmem:[#allocation5 + $0x10] sm:$0xff]  ;;  %v843_v3 = vpack.c.bf16 %v124_v1, %v123_v0  ;;  %v126_v4 = vld [vmem:[#allocation5 + $0x18] sm:$0xff]  ;;  %v127_v6 = vld [vmem:[#allocation5 + $0x20] sm:$0xff]  ;;  %875 = vmatprep.subr.bf16.mxu0 %v1132_v36  ;;  %vm1133_vm1 = vmmov 0   ;;  %s1136_s20 = smov [#allocation13]  }
  0x6e   :  { %v847_v5 = vpack.c.bf16 %v126_v4, %v125_v2  ;;  %v128_v7 = vld [vmem:[#allocation5 + $0x28] sm:$0xff]  ;;  %v121_v8 = vld [vmem:[#allocation2] sm:$0xff]  ;;  %v130_v11 = vld [vmem:[#allocation5 + $0x38] sm:$0xff]  ;;  %v1134_v2 = vmov 0.0   ;;  %s611_s19 = sshll.u32 %s1136_s20, 4  ;;  %s612_s19 = int_to_ptr.vmem [resolvable:$true] %s611_s19 }
  0x6f   :  { %844 = vmatprep.subr.bf16.mxu1 %v843_v3  ;;  %716 = vmatprep.mubr.msk.f32.mxu1 %vm138_vm0, %v121_v8  ;;  %v851_v9 = vpack.c.bf16 %v128_v7, %v127_v6  ;;  %v129_v10 = vld [vmem:[#allocation5 + $0x30] sm:$0xff]  ;;  %v222_v13 = vld [vmem:[#allocation7] sm:$0xff]  ;;  %v223_v14 = vld [vmem:[#allocation7 + $0x8] sm:$0xff]  ;;  %s1092_s21 = scalar_lea.vmem %s612_s19, 16  ;;  %s1096_s22 = scalar_lea.vmem %s612_s19, 32 }
  0x70   :  { %846 = vmatpush3.bf16.msra.mxu1 %v843_v3  ;;  %v855_v12 = vpack.c.bf16 %v130_v11, %v129_v10  ;;  %v859_v15 = vpack.c.bf16 %v223_v14, %v222_v13  ;;  %v224_v16 = vld [vmem:[#allocation7 + $0x10] sm:$0xff]  ;;  %v225_v17 = vld [vmem:[#allocation7 + $0x18] sm:$0xff]  ;;  %v226_v20 = vld [vmem:[#allocation7 + $0x20] sm:$0xff]  ;;  %770 = vmatprep.mubr.msk.f32.mxu0 %vm1133_vm1, %v1134_v2  ;;  %p1093_p6 = scmp.ne.s32.totalorder %s612_s19, %s1092_s21  ;;  %p1097_p7 = scmp.lt.s32.totalorder %s612_s19, %s612_s19 }
  0x71   :  { %848 = vmatprep.subr.bf16.mxu1 %v847_v5  ;;  %v122_v18 = vld [vmem:[#allocation2 + $0x8] sm:$0xff]  ;;  %v863_v19 = vpack.c.bf16 %v225_v17, %v224_v16  ;;  %v227_v21 = vld [vmem:[#allocation7 + $0x28] sm:$0xff]  ;;  %v228_v23 = vld [vmem:[#allocation7 + $0x30] sm:$0xff]  ;;  %p1098_p8 = scmp.lt.s32.totalorder %s1096_s22, %s1092_s21 }
  0x72   :  { %v867_v22 = vpack.c.bf16 %v227_v21, %v226_v20  ;;  %v229_v24 = vld [vmem:[#allocation7 + $0x38] sm:$0xff]  ;;  %v623_v26 = vld [vmem:[%s1371_s2] ss:$0 sm:$0xff]  ;;  %v341_v33 = vld [vmem:[#allocation8] sm:$0xff] }
  0x73   :  { %v871_v25 = vpack.c.bf16 %v229_v24, %v228_v23  ;;  %v342_v34 = vld [vmem:[#allocation8 + $0x8] sm:$0xff]  ;;  %v343_v35 = vld [vmem:[#allocation8 + $0x10] sm:$0xff]  ;;  %v344_v38 = vld [vmem:[#allocation8 + $0x18] sm:$0xff]  ;;  %p1099_p9 = por %p1098_p8, %p1097_p7 }
  0x74   :  { %850 = vmatpush3.bf16.msra.mxu1 %v847_v5  ;;  %v876_v37 = vpack.c.bf16 %v342_v34, %v341_v33  ;;  %v879_v39 = vpack.c.bf16 %v344_v38, %v343_v35  ;;  %v345_v40 = vld [vmem:[#allocation8 + $0x20] sm:$0xff]  ;;  %v346_v41 = vld [vmem:[#allocation8 + $0x28] sm:$0xff]  ;;  %v347_v43 = vld [vmem:[#allocation8 + $0x30] sm:$0xff] }
  0x75   :  { %852 = vmatprep.subr.bf16.mxu1 %v851_v9  ;;  %v882_v42 = vpack.c.bf16 %v346_v41, %v345_v40  ;;  %v348_v44 = vld [vmem:[#allocation8 + $0x38] sm:$0xff]  ;;  %v349_v46 = vld [vmem:[#allocation8 + $0x40] sm:$0xff]  ;;  %v350_v47 = vld [vmem:[#allocation8 + $0x48] sm:$0xff]  ;;  %p1100_p10 = pnand %p1099_p9, %p1093_p6 }
  0x76   :  { %877 = vmatpush3.bf16.msra.mxu0 %v876_v37  ;;  %v885_v45 = vpack.c.bf16 %v348_v44, %v347_v43  ;;  %v888_v48 = vpack.c.bf16 %v350_v47, %v349_v46  ;;  %v351_v49 = vld [vmem:[#allocation8 + $0x50] sm:$0xff]  ;;  %v352_v50 = vld [vmem:[#allocation8 + $0x58] sm:$0xff]  ;;  %v353_v52 = vld [vmem:[#allocation8 + $0x60] sm:$0xff] }
  0x77   :  { %878 = vmatprep.subr.bf16.mxu0 %v1132_v36  ;;  %v891_v51 = vpack.c.bf16 %v352_v50, %v351_v49  ;;  %v354_v53 = vld [vmem:[#allocation8 + $0x68] sm:$0xff]  ;;  %v355_v55 = vld [vmem:[#allocation8 + $0x70] sm:$0xff]  ;;  %v356_v56 = vld [vmem:[#allocation8 + $0x78] sm:$0xff] }
  0x78   :  { %854 = vmatpush3.bf16.msra.mxu1 %v851_v9  ;;  %v894_v54 = vpack.c.bf16 %v354_v53, %v353_v52  ;;  %v897_v57 = vpack.c.bf16 %v356_v56, %v355_v55  ;;  %v626_v58 = vld [vmem:[%s1373_s4] ss:$0 sm:$0xff]  ;;  %v429_v4 = vld [vmem:[#allocation10] sm:$0xff]  ;;  %v430_v5 = vld [vmem:[#allocation10 + $0x8] sm:$0xff]  ;;  %s1135_s4 = smov 64  }
  0x79   :  { %856 = vmatprep.subr.bf16.mxu1 %v855_v12  ;;  %v431_v6 = vld [vmem:[#allocation10 + $0x10] sm:$0xff]  ;;  %v900_v7 = vpack.c.bf16 %v430_v5, %v429_v4  ;;  %v432_v8 = vld [vmem:[#allocation10 + $0x18] sm:$0xff]  ;;  %v434_v13 = vld [vmem:[#allocation10 + $0x28] sm:$0xff] }
  0x7a   :  { %880 = vmatpush3.bf16.msra.mxu0 %v879_v39  ;;  %v903_v10 = vpack.c.bf16 %v432_v8, %v431_v6  ;;  %v435_v17 = vld [vmem:[#allocation10 + $0x30] sm:$0xff]  ;;  %v437_v21 = vld [vmem:[#allocation10 + $0x40] sm:$0xff]  ;;  %v444_v43 = vld [vmem:[#allocation10 + $0x78] sm:$0xff] }
  0x7b   :  { %881 = vmatprep.subr.bf16.mxu0 %v1132_v36  ;;  %v439_v24 = vld [vmem:[#allocation10 + $0x50] sm:$0xff]  ;;  %v518_v46 = vld [vmem:[#allocation11 + $0x8] sm:$0xff]  ;;  %v520_v49 = vld [vmem:[#allocation11 + $0x18] sm:$0xff] }
  0x7c   :  { %858 = vmatpush3.bf16.msra.mxu1 %v855_v12  ;;  %v433_v12 = vld [vmem:[#allocation10 + $0x20] sm:$0xff]  ;;  %v519_v47 = vld [vmem:[#allocation11 + $0x10] sm:$0xff]  ;;  %v522_v52 = vld [vmem:[#allocation11 + $0x28] sm:$0xff] }
  0x7d   :  { %860 = vmatprep.subr.bf16.mxu1 %v859_v15  ;;  %v927_v50 = vpack.c.bf16 %v520_v49, %v519_v47  ;;  %v524_v55 = vld [vmem:[#allocation11 + $0x38] sm:$0xff] }
  0x7e   :  { %883 = vmatpush3.bf16.msra.mxu0 %v882_v42  ;;  %v443_v42 = vld [vmem:[#allocation10 + $0x70] sm:$0xff]  ;;  %v532_v8 = vld [vmem:[#allocation11 + $0x78] sm:$0xff] }
  0x7f   :  { %717 = vmatmul.mubr.msk.f32.vlgmr.msra.gmra.mrb[0].mxu1 %vm138_vm0, %v122_v18  ;;  %884 = vmatprep.subr.bf16.mxu0 %v1132_v36  ;;  %v436_v18 = vld [vmem:[#allocation10 + $0x38] sm:$0xff]  ;;  %v921_v44 = vpack.c.bf16 %v444_v43, %v443_v42 }
  0x80   :  { %862 = vmatpush3.bf16.msra.mxu1 %v859_v15  ;;  %v906_v15 = vpack.c.bf16 %v434_v13, %v433_v12  ;;  %v909_v20 = vpack.c.bf16 %v436_v18, %v435_v17 }
  0x81   :  { %864 = vmatprep.subr.bf16.mxu1 %v863_v19 }
  0x82   :  { %886 = vmatpush3.bf16.msra.mxu0 %v885_v45  ;;  %v517_v45 = vld [vmem:[#allocation11] sm:$0xff] }
  0x83   :  { %887 = vmatprep.subr.bf16.mxu0 %v1132_v36 }
  0x84   :  { %866 = vmatpush3.bf16.msra.mxu1 %v863_v19 }
  0x85   :  { %868 = vmatprep.subr.bf16.mxu1 %v867_v22 }
  0x86   :  { %889 = vmatpush3.bf16.msra.mxu0 %v888_v48  ;;  %v924_v48 = vpack.c.bf16 %v518_v46, %v517_v45 }
  0x87   :  { %890 = vmatprep.subr.bf16.mxu0 %v1132_v36 }
  0x88   :  { %870 = vmatpush3.bf16.msra.mxu1 %v867_v22  ;;  %v438_v22 = vld [vmem:[#allocation10 + $0x48] sm:$0xff] }
  0x89   :  { %872 = vmatprep.subr.bf16.mxu1 %v871_v25  ;;  %v912_v23 = vpack.c.bf16 %v438_v22, %v437_v21 }
  0x8a   :  { %892 = vmatpush3.bf16.msra.mxu0 %v891_v51  ;;  %v521_v51 = vld [vmem:[#allocation11 + $0x20] sm:$0xff] }
  0x8b   :  { %893 = vmatprep.subr.bf16.mxu0 %v1132_v36  ;;  %v930_v53 = vpack.c.bf16 %v522_v52, %v521_v51 }
  0x8c   :  { %874 = vmatpush3.bf16.msra.mxu1 %v871_v25  ;;  %v440_v25 = vld [vmem:[#allocation10 + $0x58] sm:$0xff] }
  0x8d   :  { %899 = vmatprep.subr.bf16.mxu1 %v1132_v36 }
  0x8e   :  { %895 = vmatpush3.bf16.msra.mxu0 %v894_v54  ;;  %v523_v54 = vld [vmem:[#allocation11 + $0x30] sm:$0xff] }
  0x8f   :  { %896 = vmatprep.subr.bf16.mxu0 %v1132_v36  ;;  %v933_v56 = vpack.c.bf16 %v524_v55, %v523_v54 }
  0x92   :  { %898 = vmatpush3.bf16.msra.mxu0 %v897_v57  ;;  %v525_v57 = vld [vmem:[#allocation11 + $0x40] sm:$0xff] }
  0x93   :  { %923 = vmatprep.subr.bf16.mxu0 %v1132_v36 }
 0x152   :  { %v718_v27 = vpop.f32.mrb[0].mxu1 }
 0x153   :  { %v217_v28 = vadd.f32 %v718_v27, %v623_v26  ;;  %v211_v29 = vpop.f32.mrb[1].mxu1  ;;  %v441_v27 = vld [vmem:[#allocation10 + $0x60] sm:$0xff] }
 0x154   :  { %v212_v30 = vadd.f32 %v623_v26, %v211_v29  ;;  %v915_v26 = vpack.c.bf16 %v440_v25, %v439_v24 }
 0x155   :  { %v221_v32 = vmax.f32 %v217_v28, 0.0  ;;  %v442_v28 = vld [vmem:[#allocation10 + $0x68] sm:$0xff] }
 0x156   :  { %v220_v31 = vmax.f32 %v212_v30, 0.0  ;;  %v918_v29 = vpack.c.bf16 %v442_v28, %v441_v27 }
 0x158   :  { %735 = vmatprep.mubr.msk.f32.mxu1 %vm138_vm0, %v220_v31 }
 0x159   :  { %736 = vmatmul.mubr.msk.f32.vlgmr.msra.gmra.mrb[2].mxu1 %vm138_vm0, %v221_v32 }
 0x15a   :  { %805 = vmatprep.mubr.msk.f32.mxu1 %vm1133_vm1, %v1134_v2  ;;  %901 = vmatpush3.bf16.msra.mxu1 %v900_v7  ;;  %v531_v7 = vld [vmem:[#allocation11 + $0x70] sm:$0xff] }
 0x15b   :  { %902 = vmatprep.subr.bf16.mxu1 %v1132_v36 }
 0x15e   :  { %904 = vmatpush3.bf16.msra.mxu1 %v903_v10  ;;  %v445_v10 = vld [vmem:[%s1377_s8] sm:$0x1] }
 0x15f   :  { %905 = vmatprep.subr.bf16.mxu1 %v1132_v36 }
 0x162   :  { %907 = vmatpush3.bf16.msra.mxu1 %v906_v15 }
 0x163   :  { %908 = vmatprep.subr.bf16.mxu1 %v1132_v36 }
 0x166   :  { %910 = vmatpush3.bf16.msra.mxu1 %v909_v20 }
 0x167   :  { %911 = vmatprep.subr.bf16.mxu1 %v1132_v36 }
 0x16a   :  { %913 = vmatpush3.bf16.msra.mxu1 %v912_v23 }
 0x16b   :  { %914 = vmatprep.subr.bf16.mxu1 %v1132_v36 }
 0x16e   :  { %916 = vmatpush3.bf16.msra.mxu1 %v915_v26 }
 0x16f   :  { %917 = vmatprep.subr.bf16.mxu1 %v1132_v36 }
 0x172   :  { %919 = vmatpush3.bf16.msra.mxu1 %v918_v29 }
 0x173   :  { %920 = vmatprep.subr.bf16.mxu1 %v1132_v36 }
 0x176   :  { %922 = vmatpush3.bf16.msra.mxu1 %v921_v44 }
 0x22c   :  { %v737_v59 = vpop.f32.mrb[2].mxu1 }
 0x22d   :  { %v315_v60 = vadd.f32 %v737_v59, %v626_v58  ;;  %v309_v61 = vpop.f32.mrb[3].mxu1 }
 0x22e   :  { %v310_v62 = vadd.f32 %v626_v58, %v309_v61  ;;  %v526_v58 = vld [vmem:[#allocation11 + $0x48] sm:$0xff]  ;;  %v528_v61 = vld [vmem:[#allocation11 + $0x58] sm:$0xff] }
 0x22f   :  { %v319_v63 = vmax.f32 %v315_v60, 0.0  ;;  %v936_v59 = vpack.c.bf16 %v526_v58, %v525_v57  ;;  %v527_v60 = vld [vmem:[#allocation11 + $0x50] sm:$0xff] }
 0x230   :  { %v318_v30 = vmax.f32 %v310_v62, 0.0  ;;  %v939_v62 = vpack.c.bf16 %v528_v61, %v527_v60 }
 0x231   :  { %v327_v0 = vsel %vm138_vm0, %v319_v63, 0.0  ;;  %v529_v63 = vld [vmem:[#allocation11 + $0x60] sm:$0xff] }
 0x232   :  { %v328_v1 = vrot.slane %v327_v0, 4  ;;  %v320_v31 = vsel %vm138_vm0, %v318_v30, 0.0 }
 0x233   :  { %v321_v32 = vrot.slane %v320_v31, 4 }
 0x234   :  { %v329_v3 = vadd.f32 %v328_v1, %v327_v0  ;;  %v530_v0 = vld [vmem:[#allocation11 + $0x68] sm:$0xff] }
 0x235   :  { %v322_v33 = vadd.f32 %v321_v32, %v320_v31  ;;  %v942_v1 = vpack.c.bf16 %v530_v0, %v529_v63 }
 0x236   :  { %v330_v9 = vrot.slane %v329_v3, 2 }
 0x237   :  { %v323_v34 = vrot.slane %v322_v33, 2 }
 0x238   :  { %v331_v11 = vadd.f32 %v330_v9, %v329_v3  ;;  %v945_v9 = vpack.c.bf16 %v532_v8, %v531_v7 }
 0x239   :  { %v324_v35 = vadd.f32 %v323_v34, %v322_v33 }
 0x23a   :  { %v332_v14 = vrot.slane %v331_v11, 1 }
 0x23b   :  { %v325_v37 = vrot.slane %v324_v35, 1 }
 0x23c   :  { %v333_v16 = vadd.f32 %v332_v14, %v331_v11  ;;  %v533_v14 = vld [vmem:[%s1379_s10] sm:$0x1] }
 0x23d   :  { %v326_v38 = vadd.f32 %v325_v37, %v324_v35 }
 0x23e   :  { %v335_v19 = vmul.f32 0.125, %v333_v16 }
 0x23f   :  { %v334_v39 = vmul.f32 0.125, %v326_v38 }
 0x240   :  { %337 = vrot.lane.b32.xlu0 %v335_v19, %s1135_s4 }
 0x2b2   :  { %v338_v40 = vpop.permute.xlu0 %337 }
 0x2b3   :  { %v340_v41 = vsel %vm138_vm0, %v334_v39, %v338_v40 }
 0x2b4   :  { %771 = vmatmul.mubr.f32.vlgmr.msra.gmra.mrb[0].mxu0 %v340_v41 }
 0x2b5   :  { %840 = vmatprep.mubr.msk.f32.mxu0 %vm1133_vm1, %v1134_v2  ;;  %925 = vmatpush3.bf16.msra.mxu0 %v924_v48  ;;  %v357_v2 = vld [vmem:[%s1375_s6] sm:$0x1] }
 0x2b6   :  { %926 = vmatprep.subr.bf16.mxu0 %v1132_v36 }
 0x2b9   :  { %928 = vmatpush3.bf16.msra.mxu0 %v927_v50 }
 0x2ba   :  { %929 = vmatprep.subr.bf16.mxu0 %v1132_v36 }
 0x2bd   :  { %931 = vmatpush3.bf16.msra.mxu0 %v930_v53 }
 0x2be   :  { %932 = vmatprep.subr.bf16.mxu0 %v1132_v36 }
 0x2c1   :  { %934 = vmatpush3.bf16.msra.mxu0 %v933_v56 }
 0x2c2   :  { %935 = vmatprep.subr.bf16.mxu0 %v1132_v36 }
 0x2c5   :  { %937 = vmatpush3.bf16.msra.mxu0 %v936_v59 }
 0x2c6   :  { %938 = vmatprep.subr.bf16.mxu0 %v1132_v36 }
 0x2c9   :  { %940 = vmatpush3.bf16.msra.mxu0 %v939_v62 }
 0x2ca   :  { %941 = vmatprep.subr.bf16.mxu0 %v1132_v36 }
 0x2cd   :  { %943 = vmatpush3.bf16.msra.mxu0 %v942_v1 }
 0x2ce   :  { %944 = vmatprep.subr.bf16.mxu0 %v1132_v36 }
 0x2d1   :  { %946 = vmatpush3.bf16.msra.mxu0 %v945_v9 }
 0x387   :  { %v424_v3 = vpop.f32.mrb[0].mxu0 }
 0x388   :  { %v425_v4 = vadd.f32 %v424_v3, %v357_v2  ;;  %v772_v5 = vpop.f32.mrb[1].mxu0 }
 0x38a   :  { %v428_v6 = vmax.f32 %v425_v4, 0.0 }
 0x38c   :  { %806 = vmatmul.mubr.f32.vlgmr.msra.gmra.mrb[4].mxu1 %v428_v6 }
 0x45f   :  { %v512_v11 = vpop.f32.mrb[4].mxu1 }
 0x460   :  { %v513_v12 = vadd.f32 %v512_v11, %v445_v10  ;;  %v807_v36 = vpop.f32.mrb[5].mxu1 }
 0x462   :  { %v516_v13 = vmax.f32 %v513_v12, 0.0 }
 0x464   :  { %841 = vmatmul.mubr.f32.vlgmr.msra.gmra.mrb[2].mxu0 %v516_v13 }
 0x537   :  { %v600_v15 = vpop.f32.mrb[2].mxu0 }
 0x538   :  { %v601_v16 = vadd.f32 %v600_v15, %v533_v14  ;;  %v842_v17 = vpop.f32.mrb[3].mxu0 }
 0x53a   :  { %604 = vst [vmem:[#allocation13] sm:$0x1] %v601_v16 }
 0x53b   :  { %1103 = shalt.err (!%p1100_p10)
}
 0x53c   :  { %s1104_s27 = scalar_lea.hbm %s1380_s11, 16 }
 0x53d   :  { %p1105_p11 = scmp.ne.s32.totalorder %s1380_s11, %s1104_s27  ;;  %p1108_p12 = scmp.lt.u32.totalorder %s1104_s27, %s1380_s11 }
 0x53f   :  { %p1110_p13 = pnand %p1108_p12, %p1105_p11 }
 0x541   :  { %1113 = shalt.err (!%p1110_p13)
}
 0x542   :  { %614 = dma.vmem_to_hbm [thread:$0]  %s612_s19, 16, %s1380_s11, [#allocation4]  }
 0x543   :  { %1122 = dma.done.wait [#allocation4], 16  }
 0x544   :  { %1123 = vsyncadd [#allocation4], 4294967280 }
 0x545   :  { %618 = vsyncpa [#allocation3], 1 }
 0x546   :  { %619 = vsyncpa [#allocation6], 1 }
 0x547   :  { %620 = vsyncpa [#allocation9], 1 }
 0x548   :  { %621 = vsyncpa [#allocation12], 1 }
 0x549   :  { %622 = vsyncpa [#allocation4], 1 }

</bundles_post_ra>
